<compile_context>
chip_gen: v7x
topology: tpu7x:2x2x1
jax: 0.10.0
libtpu: 0.0.40
codegen_flags: <defaults>
</compile_context>

<pallas_src>
import jax
import jax.numpy as jnp
from jax import lax
from jax.experimental import pallas as pl
from jax.experimental.pallas import tpu as pltpu


_BN_EPS = 1e-5
_LEAKY_SLOPE = 0.01
_LANE = 128
_MiB = 1 << 20


def _round_up(n, m):
    return ((n + m - 1) // m) * m


def _ceil_div(a, b):
    return -(-a // b)


def _vmem_capacity_bytes():
    """Per-core VMEM capacity; conservative (v7x = 64 MiB) fallback."""
    try:
        return int(pltpu.get_tpu_info().vmem_capacity_bytes)
    except Exception:
        return 64 * _MiB


def _choose_tiling(B, n_loci, NP, LP, F):
    """Adaptive K-tile: fill a generous fraction of this generation's VMEM with
    the double-buffered streaming working set, balance tile sizes so the last
    tile is not mostly zero padding, and return a matching vmem limit."""
    cap = _vmem_capacity_bytes()
    budget = int(cap * 0.55)                     # explicit kernel buffers
    # Buffers whose size does not depend on tk (w2/aux single-buffered).
    fixed = (B * NP * 4            # f32 Linear1 accumulator (VMEM scratch)
             + NP * LP * 2         # w2 bf16 (single-buffered)
             + 4 * F * 4           # packed BN affine rows
             + 2 * B * LP * 4)     # f32 output block (double-buffered)
    # Per 128 columns of K: double-buffered bf16 x-tile + w1-tile.
    per_unit = 2 * (B * _LANE + _LANE * NP) * 2
    k_units = _round_up(n_loci, _LANE) // _LANE
    budget_units = max(1, (budget - fixed) // per_unit)
    n_k = max(1, _ceil_div(k_units, budget_units))   # number of grid steps
    units = _ceil_div(k_units, n_k)                  # balanced tile width
    tk = units * _LANE
    required = fixed + units * per_unit
    vmem_limit = int(min(cap * 0.85, max(32 * _MiB, required + 8 * _MiB)))
    return tk, vmem_limit


def _gq_net_kernel(x_ref, w1_ref, w2_ref, aux_ref, o_ref, acc_ref):
    """GQ_net encoder; grid axis 0 tiles the n_loci (K) reduction.

    x_ref  : (B, tk)   bf16 tile of the zero-padded genotype matrix
    w1_ref : (tk, NP)  bf16 tile of Linear1 weights, laid out (in, out)
    w2_ref : (NP, LP)  bf16 Linear2 weights (constant index_map, single-buffered)
    aux_ref: (4, F)    f32 rows [gamma1, beta1, gamma2, beta2], zero-padded
    o_ref  : (B, LP)   f32 output block (written on the last K step only)
    acc_ref: (B, NP)   f32 VMEM accumulator for Linear1
    """
    k = pl.program_id(0)

    # Linear1 partial product on the MXU (bf16 in, f32 accumulate).  Linear
    # biases are omitted: training-mode BN's batch-mean subtraction cancels
    # any per-feature constant exactly.
    part = jnp.dot(x_ref[...], w1_ref[...], preferred_element_type=jnp.float32)

    @pl.when(k == 0)
    def _():
        acc_ref[...] = part            # first step: plain store (no zero + RMW)

    @pl.when(k > 0)
    def _():
        acc_ref[...] += part

    @pl.when(k == pl.num_programs(0) - 1)
    def _():
        h = acc_ref[...]                                   # (B, NP) f32
        np_ = h.shape[1]
        lp = o_ref.shape[1]
        aux = aux_ref[...]                                 # (4, F)  f32

        # ---- BatchNorm1d(N), training mode, fused scale/shift ----
        mean1 = jnp.mean(h, axis=0, keepdims=True)
        var1 = jnp.maximum(jnp.mean(h * h, axis=0, keepdims=True)
                           - mean1 * mean1, 0.0)
        scale1 = aux[0:1, :np_] * lax.rsqrt(var1 + _BN_EPS)
        shift1 = aux[1:2, :np_] - mean1 * scale1
        h = h * scale1 + shift1
        h = jnp.where(h > 0, h, _LEAKY_SLOPE * h)          # LeakyReLU(0.01)

        # ---- Linear2 on the MXU (bf16 in, f32 accumulate), bias dropped ----
        z = jnp.dot(h.astype(jnp.bfloat16), w2_ref[...],
                    preferred_element_type=jnp.float32)    # (B, LP) f32

        # ---- BatchNorm1d(latent_dim), training mode, fused ----
        mean2 = jnp.mean(z, axis=0, keepdims=True)
        var2 = jnp.maximum(jnp.mean(z * z, axis=0, keepdims=True)
                           - mean2 * mean2, 0.0)
        scale2 = aux[2:3, :lp] * lax.rsqrt(var2 + _BN_EPS)
        shift2 = aux[3:4, :lp] - mean2 * scale2
        z = z * scale2 + shift2
        o_ref[...] = jnp.where(z > 0, z, _LEAKY_SLOPE * z)


def prepare_params(params, n_loci, batch_size):
    """One-time weight packing (hoisted out of the per-call path).

    Returns padded, pre-transposed bf16 weights, the packed BN affine block,
    and the tiling/compiler parameters chosen for this generation's VMEM.
    """
    w1, w2 = params["w1"], params["w2"]          # (N, n_loci), (latent, N)
    N, latent_dim = w1.shape[0], w2.shape[0]
    NP = _round_up(N, _LANE)                     # lane-dense hidden width
    LP = _round_up(latent_dim, _LANE)            # lane-dense output width
    F = max(NP, LP)

    tk, vmem_limit = _choose_tiling(batch_size, n_loci, NP, LP, F)
    KP = _round_up(n_loci, tk)

    # Zero-padded, pre-transposed (in, out), bf16 weights.  Padding rows/cols
    # are exactly zero -> no effect on real outputs.
    w1t = jnp.zeros((KP, NP), jnp.bfloat16).at[:n_loci, :N].set(
        w1.T.astype(jnp.bfloat16))
    w2t = jnp.zeros((NP, LP), jnp.bfloat16).at[:N, :latent_dim].set(
        w2.T.astype(jnp.bfloat16))

    # All four BN affine vectors packed into one f32 block (one DMA).
    aux = jnp.zeros((4, F), jnp.float32)
    aux = aux.at[0, :N].set(params["g1"])
    aux = aux.at[1, :N].set(params["be1"])
    aux = aux.at[2, :latent_dim].set(params["g2"])
    aux = aux.at[3, :latent_dim].set(params["be2"])

    return {
        "w1t": w1t, "w2t": w2t, "aux": aux,
        "n_loci": n_loci, "N": N, "latent_dim": latent_dim,
        "NP": NP, "LP": LP, "F": F, "KP": KP, "tk": tk,
        "vmem_limit": vmem_limit,
    }


def _build_pallas_call(B, KP, NP, LP, F, tk, vmem_limit, single_buffer_consts):
    n_k = KP // tk
    const_kwargs = {}
    if single_buffer_consts:
        # Constant-index blocks: a second pipeline buffer would be wasted VMEM.
        const_kwargs = dict(pipeline_mode=pl.Buffered(1))
    in_specs = [
        pl.BlockSpec((B, tk), lambda k: (0, k)),                   # x K-tiles
        pl.BlockSpec((tk, NP), lambda k: (k, 0)),                  # w1 K-tiles
        pl.BlockSpec((NP, LP), lambda k: (0, 0), **const_kwargs),  # w2 resident
        pl.BlockSpec((4, F), lambda k: (0, 0), **const_kwargs),    # BN affines
    ]
    return pl.pallas_call(
        _gq_net_kernel,
        out_shape=jax.ShapeDtypeStruct((B, LP), jnp.float32),
        grid_spec=pltpu.PrefetchScalarGridSpec(
            num_scalar_prefetch=0,
            grid=(n_k,),
            in_specs=in_specs,
            out_specs=pl.BlockSpec((B, LP), lambda k: (0, 0)),
            scratch_shapes=[pltpu.VMEM((B, NP), jnp.float32)],
        ),
        compiler_params=pltpu.CompilerParams(
            dimension_semantics=("arbitrary",),
            vmem_limit_bytes=vmem_limit),
    )


def gq_net_forward(x, prepped):
    """x: (B, n_loci) f32.  prepped: output of prepare_params (weights packed
    once; only the activations are padded/cast per call)."""
    B = x.shape[0]
    n_loci = prepped["n_loci"]
    KP, NP, LP, F = prepped["KP"], prepped["NP"], prepped["LP"], prepped["F"]
    tk, vmem_limit = prepped["tk"], prepped["vmem_limit"]

    xp = jnp.zeros((B, KP), jnp.bfloat16).at[:, :n_loci].set(
        x.astype(jnp.bfloat16))
    args = (xp, prepped["w1t"], prepped["w2t"], prepped["aux"])

    try:
        out = _build_pallas_call(B, KP, NP, LP, F, tk, vmem_limit, True)(*args)
    except Exception:
        # Fallback if this jax build rejects pipeline_mode=pl.Buffered(1).
        out = _build_pallas_call(B, KP, NP, LP, F, tk, vmem_limit, False)(*args)
    return out[:, :prepped["latent_dim"]]


def init_params(key, n_loci, N, latent_dim):
    """Deterministic synthetic parameters in PyTorch layout (weight = (out,in))."""
    ks = jax.random.split(key, 8)
    return {
        "w1": jax.random.normal(ks[0], (N, n_loci), jnp.float32) * 0.05,
        "b1": jax.random.normal(ks[1], (N,), jnp.float32) * 0.05,
        "w2": jax.random.normal(ks[2], (latent_dim, N), jnp.float32) * 0.05,
        "b2": jax.random.normal(ks[3], (latent_dim,), jnp.float32) * 0.05,
        "g1": 1.0 + 0.1 * jax.random.normal(ks[4], (N,), jnp.float32),
        "be1": 0.1 * jax.random.normal(ks[5], (N,), jnp.float32),
        "g2": 1.0 + 0.1 * jax.random.normal(ks[6], (latent_dim,), jnp.float32),
        "be2": 0.1 * jax.random.normal(ks[7], (latent_dim,), jnp.float32),
    }


def reference_forward_f32(x, params):
    """Exact PyTorch-semantics forward: f32 matmuls WITH Linear biases."""
    h = x @ params["w1"].T + params["b1"]
    m, v = jnp.mean(h, 0, keepdims=True), jnp.var(h, 0, keepdims=True)
    h = (h - m) / jnp.sqrt(v + _BN_EPS) * params["g1"] + params["be1"]
    h = jnp.where(h > 0, h, _LEAKY_SLOPE * h)
    z = h @ params["w2"].T + params["b2"]
    m, v = jnp.mean(z, 0, keepdims=True), jnp.var(z, 0, keepdims=True)
    z = (z - m) / jnp.sqrt(v + _BN_EPS) * params["g2"] + params["be2"]
    return jnp.where(z > 0, z, _LEAKY_SLOPE * z)


def reference_forward_kernel_numerics(x, params):
    """Mirror of the kernel numerics: bf16 MXU inputs, bias-free, fused BN."""
    h = jnp.dot(x.astype(jnp.bfloat16), params["w1"].T.astype(jnp.bfloat16),
                preferred_element_type=jnp.float32)
    m = jnp.mean(h, 0, keepdims=True)
    v = jnp.maximum(jnp.mean(h * h, 0, keepdims=True) - m * m, 0.0)
    s = params["g1"] * lax.rsqrt(v + _BN_EPS)
    h = h * s + (params["be1"] - m * s)
    h = jnp.where(h > 0, h, _LEAKY_SLOPE * h)
    z = jnp.dot(h.astype(jnp.bfloat16), params["w2"].T.astype(jnp.bfloat16),
                preferred_element_type=jnp.float32)
    m = jnp.mean(z, 0, keepdims=True)
    v = jnp.maximum(jnp.mean(z * z, 0, keepdims=True) - m * m, 0.0)
    s = params["g2"] * lax.rsqrt(v + _BN_EPS)
    z = z * s + (params["be2"] - m * s)
    return jnp.where(z > 0, z, _LEAKY_SLOPE * z)


if __name__ == "__main__":
    # Small shapes consistent with the module:
    #   n_loci = n_loci_measured * n_alleles = 32 * 2 = 64
    #   N (ge_hidden_dim) = 32, latent_dim = 16, batch = 8
    B, n_loci, N, latent_dim = 8, 64, 32, 16

    key = jax.random.PRNGKey(0)
    kx, kp = jax.random.split(key)
    x = jax.random.normal(kx, (B, n_loci), jnp.float32)
    params = init_params(kp, n_loci, N, latent_dim)

    prepped = prepare_params(params, n_loci, batch_size=B)   # one-time packing
    out = jax.block_until_ready(gq_net_forward(x, prepped))
    assert out.shape == (B, latent_dim)

    # Tight check vs a reference that mirrors kernel numerics exactly.
    ref_k = reference_forward_kernel_numerics(x, params)
    assert jnp.allclose(out, ref_k, atol=1e-4, rtol=1e-4), \
        "mismatch vs kernel-numerics ref"

    # Sanity vs exact f32 PyTorch semantics (biases included): bias removal is
    # exact under training-mode BN; remaining deltas are bf16 matmul rounding.
    ref_f32 = reference_forward_f32(x, params)
    assert jnp.allclose(out, ref_f32, atol=1e-1, rtol=1e-1), \
        "mismatch vs f32 reference"

    print("KERNEL_OK")
</pallas_src>

<mosaic_0001>
module attributes {stable_mosaic.version = 11 : i64} {
  func.func @_gq_net_kernel(%arg0: i32, %arg1: memref<8x128xbf16, #tpu.memory_space<vmem>>, %arg2: memref<128x128xbf16, #tpu.memory_space<vmem>>, %arg3: memref<128x128xbf16, #tpu.memory_space<vmem>>, %arg4: memref<4x128xf32, #tpu.memory_space<vmem>>, %arg5: memref<8x128xf32, #tpu.memory_space<vmem>>, %arg6: memref<8x128xf32, #tpu.memory_space<vmem>>) attributes {dimension_semantics = [#tpu.dimension_semantics<arbitrary>], iteration_bounds = array<i64: 1>, scalar_prefetch = 0 : i64, scratch_operands = 1 : i64, tpu.core_type = #tpu.core_type<tc>, window_params = [{transform_indices = @transform_0, window_bounds = array<i64: 8, 128>}, {transform_indices = @transform_1, window_bounds = array<i64: 128, 128>}, {pipeline_mode = #tpu.pipeline_mode<synchronous>, transform_indices = @transform_2, window_bounds = array<i64: 128, 128>}, {pipeline_mode = #tpu.pipeline_mode<synchronous>, transform_indices = @transform_3, window_bounds = array<i64: 4, 128>}, {pipeline_mode = #tpu.pipeline_mode<synchronous>, transform_indices = @transform_4, window_bounds = array<i64: 8, 128>}]} {
    %c0 = arith.constant 0 : index
    %c0_0 = arith.constant 0 : index
    %0 = vector.load %arg1[%c0, %c0_0] : memref<8x128xbf16, #tpu.memory_space<vmem>>, vector<8x128xbf16>
    %c0_1 = arith.constant 0 : index
    %c0_2 = arith.constant 0 : index
    %1 = vector.load %arg2[%c0_1, %c0_2] : memref<128x128xbf16, #tpu.memory_space<vmem>>, vector<128x128xbf16>
    %cst = arith.constant dense<0.000000e+00> : vector<8x128xf32>
    %2 = tpu.matmul %0, %1, %cst {dimension_numbers = #tpu.dot_dimension_numbers<[1], [0], [0], [1], [0, 0, 1, 1], [], []>} : vector<8x128xbf16>, vector<128x128xbf16>, vector<8x128xf32> -> vector<8x128xf32>
    %c0_i32 = arith.constant 0 : i32
    %3 = arith.cmpi eq, %arg0, %c0_i32 : i32
    %4 = arith.extui %3 : i1 to i32
    %c0_i32_3 = arith.constant 0 : i32
    %5 = arith.cmpi ne, %4, %c0_i32_3 : i32
    scf.if %5 {
      %c0_8 = arith.constant 0 : index
      %c0_9 = arith.constant 0 : index
      %12 = vector.load %arg6[%c0_8, %c0_9] : memref<8x128xf32, #tpu.memory_space<vmem>>, vector<8x128xf32>
      tpu.vector_store %arg6[%c0_8, %c0_9], %2 {strides = array<i32>} : memref<8x128xf32, #tpu.memory_space<vmem>>, vector<8x128xf32>,
    } else {
    }
    %c0_i32_4 = arith.constant 0 : i32
    %6 = arith.cmpi sgt, %arg0, %c0_i32_4 : i32
    %7 = arith.extui %6 : i1 to i32
    %c0_i32_5 = arith.constant 0 : i32
    %8 = arith.cmpi ne, %7, %c0_i32_5 : i32
    scf.if %8 {
      %c0_8 = arith.constant 0 : index
      %c0_9 = arith.constant 0 : index
      %12 = vector.load %arg6[%c0_8, %c0_9] : memref<8x128xf32, #tpu.memory_space<vmem>>, vector<8x128xf32>
      %13 = arith.addf %12, %2 : vector<8x128xf32>
      %c0_10 = arith.constant 0 : index
      %c0_11 = arith.constant 0 : index
      %14 = vector.load %arg6[%c0_10, %c0_11] : memref<8x128xf32, #tpu.memory_space<vmem>>, vector<8x128xf32>
      tpu.vector_store %arg6[%c0_10, %c0_11], %13 {strides = array<i32>} : memref<8x128xf32, #tpu.memory_space<vmem>>, vector<8x128xf32>,
    } else {
    }
    %c0_i32_6 = arith.constant 0 : i32
    %9 = arith.cmpi eq, %arg0, %c0_i32_6 : i32
    %10 = arith.extui %9 : i1 to i32
    %c0_i32_7 = arith.constant 0 : i32
    %11 = arith.cmpi ne, %10, %c0_i32_7 : i32
    scf.if %11 {
      %c0_8 = arith.constant 0 : index
      %c0_9 = arith.constant 0 : index
      %12 = vector.load %arg6[%c0_8, %c0_9] : memref<8x128xf32, #tpu.memory_space<vmem>>, vector<8x128xf32>
      %c0_10 = arith.constant 0 : index
      %c0_11 = arith.constant 0 : index
      %13 = vector.load %arg4[%c0_10, %c0_11] : memref<4x128xf32, #tpu.memory_space<vmem>>, vector<4x128xf32>
      %cst_12 = arith.constant dense<0.000000e+00> : vector<128xf32>
      %14 = vector.multi_reduction <add>, %12, %cst_12 [0] : vector<8x128xf32> to vector<128xf32>
      %15 = vector.shape_cast %14 : vector<128xf32> to vector<1x128xf32>
      %cst_13 = arith.constant 8.000000e+00 : f32
      %16 = vector.broadcast %cst_13 : f32 to vector<1x128xf32>
      %17 = arith.divf %15, %16 : vector<1x128xf32>
      %18 = arith.mulf %12, %12 : vector<8x128xf32>
      %cst_14 = arith.constant dense<0.000000e+00> : vector<128xf32>
      %19 = vector.multi_reduction <add>, %18, %cst_14 [0] : vector<8x128xf32> to vector<128xf32>
      %20 = vector.shape_cast %19 : vector<128xf32> to vector<1x128xf32>
      %cst_15 = arith.constant 8.000000e+00 : f32
      %21 = vector.broadcast %cst_15 : f32 to vector<1x128xf32>
      %22 = arith.divf %20, %21 : vector<1x128xf32>
      %23 = arith.mulf %17, %17 : vector<1x128xf32>
      %24 = arith.subf %22, %23 : vector<1x128xf32>
      %cst_16 = arith.constant 0.000000e+00 : f32
      %25 = vector.broadcast %cst_16 : f32 to vector<1x128xf32>
      %26 = arith.maximumf %24, %25 : vector<1x128xf32>
      %27 = vector.extract_strided_slice %13 {offsets = [0, 0], sizes = [1, 128], strides = [1, 1]} : vector<4x128xf32> to vector<1x128xf32>
      %cst_17 = arith.constant 9.99999974E-6 : f32
      %28 = vector.broadcast %cst_17 : f32 to vector<1x128xf32>
      %29 = arith.addf %26, %28 : vector<1x128xf32>
      %30 = math.rsqrt %29 : vector<1x128xf32>
      %31 = arith.mulf %27, %30 : vector<1x128xf32>
      %32 = vector.extract_strided_slice %13 {offsets = [1, 0], sizes = [1, 128], strides = [1, 1]} : vector<4x128xf32> to vector<1x128xf32>
      %33 = arith.mulf %17, %31 : vector<1x128xf32>
      %34 = arith.subf %32, %33 : vector<1x128xf32>
      %35 = vector.broadcast %31 : vector<1x128xf32> to vector<8x128xf32>
      %36 = arith.mulf %12, %35 : vector<8x128xf32>
      %37 = vector.broadcast %34 : vector<1x128xf32> to vector<8x128xf32>
      %38 = arith.addf %36, %37 : vector<8x128xf32>
      %cst_18 = arith.constant 0.000000e+00 : f32
      %39 = vector.broadcast %cst_18 : f32 to vector<8x128xf32>
      %40 = arith.cmpf ogt, %38, %39 : vector<8x128xf32>
      %cst_19 = arith.constant 0.00999999977 : f32
      %41 = vector.broadcast %cst_19 : f32 to vector<8x128xf32>
      %42 = arith.mulf %41, %38 : vector<8x128xf32>
      %43 = arith.select %40, %38, %42 : vector<8x128xi1>, vector<8x128xf32>
      %44 = arith.truncf %43 : vector<8x128xf32> to vector<8x128xbf16>
      %c0_20 = arith.constant 0 : index
      %c0_21 = arith.constant 0 : index
      %45 = vector.load %arg3[%c0_20, %c0_21] : memref<128x128xbf16, #tpu.memory_space<vmem>>, vector<128x128xbf16>
      %cst_22 = arith.constant dense<0.000000e+00> : vector<8x128xf32>
      %46 = tpu.matmul %44, %45, %cst_22 {dimension_numbers = #tpu.dot_dimension_numbers<[1], [0], [0], [1], [0, 0, 1, 1], [], []>} : vector<8x128xbf16>, vector<128x128xbf16>, vector<8x128xf32> -> vector<8x128xf32>
      %cst_23 = arith.constant dense<0.000000e+00> : vector<128xf32>
      %47 = vector.multi_reduction <add>, %46, %cst_23 [0] : vector<8x128xf32> to vector<128xf32>
      %48 = vector.shape_cast %47 : vector<128xf32> to vector<1x128xf32>
      %cst_24 = arith.constant 8.000000e+00 : f32
      %49 = vector.broadcast %cst_24 : f32 to vector<1x128xf32>
      %50 = arith.divf %48, %49 : vector<1x128xf32>
      %51 = arith.mulf %46, %46 : vector<8x128xf32>
      %cst_25 = arith.constant dense<0.000000e+00> : vector<128xf32>
      %52 = vector.multi_reduction <add>, %51, %cst_25 [0] : vector<8x128xf32> to vector<128xf32>
      %53 = vector.shape_cast %52 : vector<128xf32> to vector<1x128xf32>
      %cst_26 = arith.constant 8.000000e+00 : f32
      %54 = vector.broadcast %cst_26 : f32 to vector<1x128xf32>
      %55 = arith.divf %53, %54 : vector<1x128xf32>
      %56 = arith.mulf %50, %50 : vector<1x128xf32>
      %57 = arith.subf %55, %56 : vector<1x128xf32>
      %cst_27 = arith.constant 0.000000e+00 : f32
      %58 = vector.broadcast %cst_27 : f32 to vector<1x128xf32>
      %59 = arith.maximumf %57, %58 : vector<1x128xf32>
      %60 = vector.extract_strided_slice %13 {offsets = [2, 0], sizes = [1, 128], strides = [1, 1]} : vector<4x128xf32> to vector<1x128xf32>
      %cst_28 = arith.constant 9.99999974E-6 : f32
      %61 = vector.broadcast %cst_28 : f32 to vector<1x128xf32>
      %62 = arith.addf %59, %61 : vector<1x128xf32>
      %63 = math.rsqrt %62 : vector<1x128xf32>
      %64 = arith.mulf %60, %63 : vector<1x128xf32>
      %65 = vector.extract_strided_slice %13 {offsets = [3, 0], sizes = [1, 128], strides = [1, 1]} : vector<4x128xf32> to vector<1x128xf32>
      %66 = arith.mulf %50, %64 : vector<1x128xf32>
      %67 = arith.subf %65, %66 : vector<1x128xf32>
      %68 = vector.broadcast %64 : vector<1x128xf32> to vector<8x128xf32>
      %69 = arith.mulf %46, %68 : vector<8x128xf32>
      %70 = vector.broadcast %67 : vector<1x128xf32> to vector<8x128xf32>
      %71 = arith.addf %69, %70 : vector<8x128xf32>
      %cst_29 = arith.constant 0.000000e+00 : f32
      %72 = vector.broadcast %cst_29 : f32 to vector<8x128xf32>
      %73 = arith.cmpf ogt, %71, %72 : vector<8x128xf32>
      %cst_30 = arith.constant 0.00999999977 : f32
      %74 = vector.broadcast %cst_30 : f32 to vector<8x128xf32>
      %75 = arith.mulf %74, %71 : vector<8x128xf32>
      %76 = arith.select %73, %71, %75 : vector<8x128xi1>, vector<8x128xf32>
      %c0_31 = arith.constant 0 : index
      %c0_32 = arith.constant 0 : index
      %77 = vector.load %arg5[%c0_31, %c0_32] : memref<8x128xf32, #tpu.memory_space<vmem>>, vector<8x128xf32>
      tpu.vector_store %arg5[%c0_31, %c0_32], %76 {strides = array<i32>} : memref<8x128xf32, #tpu.memory_space<vmem>>, vector<8x128xf32>,
    } else {
    }
    return
  }
  func.func @transform_0(%arg0: i32) -> (i32, i32) {
    %c0_i32 = arith.constant 0 : i32
    %c0_i32_0 = arith.constant 0 : i32
    return %c0_i32, %arg0 : i32, i32
  }
  func.func @transform_1(%arg0: i32) -> (i32, i32) {
    %c0_i32 = arith.constant 0 : i32
    %c0_i32_0 = arith.constant 0 : i32
    return %arg0, %c0_i32 : i32, i32
  }
  func.func @transform_2(%arg0: i32) -> (i32, i32) {
    %c0_i32 = arith.constant 0 : i32
    %c0_i32_0 = arith.constant 0 : i32
    %c0_i32_1 = arith.constant 0 : i32
    return %c0_i32, %c0_i32_0 : i32, i32
  }
  func.func @transform_3(%arg0: i32) -> (i32, i32) {
    %c0_i32 = arith.constant 0 : i32
    %c0_i32_0 = arith.constant 0 : i32
    %c0_i32_1 = arith.constant 0 : i32
    return %c0_i32, %c0_i32_0 : i32, i32
  }
  func.func @transform_4(%arg0: i32) -> (i32, i32) {
    %c0_i32 = arith.constant 0 : i32
    %c0_i32_0 = arith.constant 0 : i32
    %c0_i32_1 = arith.constant 0 : i32
    return %c0_i32, %c0_i32_0 : i32, i32
  }
}

module attributes {stable_mosaic.version = 11 : i64} {
  func.func @_gq_net_kernel(%arg0: i32, %arg1: memref<8x128xbf16, #tpu.memory_space<vmem>>, %arg2: memref<128x128xbf16, #tpu.memory_space<vmem>>, %arg3: memref<128x128xbf16, #tpu.memory_space<vmem>>, %arg4: memref<4x128xf32, #tpu.memory_space<vmem>>, %arg5: memref<8x128xf32, #tpu.memory_space<vmem>>, %arg6: memref<8x128xf32, #tpu.memory_space<vmem>>) attributes {dimension_semantics = [#tpu.dimension_semantics<arbitrary>], iteration_bounds = array<i64: 1>, scalar_prefetch = 0 : i64, scratch_operands = 1 : i64, tpu.core_type = #tpu.core_type<tc>, window_params = [{transform_indices = @transform_0, window_bounds = array<i64: 8, 128>}, {transform_indices = @transform_1, window_bounds = array<i64: 128, 128>}, {pipeline_mode = #tpu.pipeline_mode<synchronous>, transform_indices = @transform_2, window_bounds = array<i64: 128, 128>}, {pipeline_mode = #tpu.pipeline_mode<synchronous>, transform_indices = @transform_3, window_bounds = array<i64: 4, 128>}, {pipeline_mode = #tpu.pipeline_mode<synchronous>, transform_indices = @transform_4, window_bounds = array<i64: 8, 128>}]} {
    %c0 = arith.constant 0 : index
    %c0_0 = arith.constant 0 : index
    %0 = vector.load %arg1[%c0, %c0_0] : memref<8x128xbf16, #tpu.memory_space<vmem>>, vector<8x128xbf16>
    %c0_1 = arith.constant 0 : index
    %c0_2 = arith.constant 0 : index
    %1 = vector.load %arg2[%c0_1, %c0_2] : memref<128x128xbf16, #tpu.memory_space<vmem>>, vector<128x128xbf16>
    %cst = arith.constant dense<0.000000e+00> : vector<8x128xf32>
    %2 = tpu.matmul %0, %1, %cst {dimension_numbers = #tpu.dot_dimension_numbers<[1], [0], [0], [1], [0, 0, 1, 1], [], []>} : vector<8x128xbf16>, vector<128x128xbf16>, vector<8x128xf32> -> vector<8x128xf32>
    %c0_i32 = arith.constant 0 : i32
    %3 = arith.cmpi eq, %arg0, %c0_i32 : i32
    %4 = arith.extui %3 : i1 to i32
    %c0_i32_3 = arith.constant 0 : i32
    %5 = arith.cmpi ne, %4, %c0_i32_3 : i32
    scf.if %5 {
      %c0_8 = arith.constant 0 : index
      %c0_9 = arith.constant 0 : index
      %12 = vector.load %arg6[%c0_8, %c0_9] : memref<8x128xf32, #tpu.memory_space<vmem>>, vector<8x128xf32>
      tpu.vector_store %arg6[%c0_8, %c0_9], %2 {strides = array<i32>} : memref<8x128xf32, #tpu.memory_space<vmem>>, vector<8x128xf32>,
    } else {
    }
    %c0_i32_4 = arith.constant 0 : i32
    %6 = arith.cmpi sgt, %arg0, %c0_i32_4 : i32
    %7 = arith.extui %6 : i1 to i32
    %c0_i32_5 = arith.constant 0 : i32
    %8 = arith.cmpi ne, %7, %c0_i32_5 : i32
    scf.if %8 {
      %c0_8 = arith.constant 0 : index
      %c0_9 = arith.constant 0 : index
      %12 = vector.load %arg6[%c0_8, %c0_9] : memref<8x128xf32, #tpu.memory_space<vmem>>, vector<8x128xf32>
      %13 = arith.addf %12, %2 : vector<8x128xf32>
      %c0_10 = arith.constant 0 : index
      %c0_11 = arith.constant 0 : index
      %14 = vector.load %arg6[%c0_10, %c0_11] : memref<8x128xf32, #tpu.memory_space<vmem>>, vector<8x128xf32>
      tpu.vector_store %arg6[%c0_10, %c0_11], %13 {strides = array<i32>} : memref<8x128xf32, #tpu.memory_space<vmem>>, vector<8x128xf32>,
    } else {
    }
    %c0_i32_6 = arith.constant 0 : i32
    %9 = arith.cmpi eq, %arg0, %c0_i32_6 : i32
    %10 = arith.extui %9 : i1 to i32
    %c0_i32_7 = arith.constant 0 : i32
    %11 = arith.cmpi ne, %10, %c0_i32_7 : i32
    scf.if %11 {
      %c0_8 = arith.constant 0 : index
      %c0_9 = arith.constant 0 : index
      %12 = vector.load %arg6[%c0_8, %c0_9] : memref<8x128xf32, #tpu.memory_space<vmem>>, vector<8x128xf32>
      %c0_10 = arith.constant 0 : index
      %c0_11 = arith.constant 0 : index
      %13 = vector.load %arg4[%c0_10, %c0_11] : memref<4x128xf32, #tpu.memory_space<vmem>>, vector<4x128xf32>
      %cst_12 = arith.constant dense<0.000000e+00> : vector<128xf32>
      %14 = vector.multi_reduction <add>, %12, %cst_12 [0] : vector<8x128xf32> to vector<128xf32>
      %15 = vector.shape_cast %14 : vector<128xf32> to vector<1x128xf32>
      %cst_13 = arith.constant 8.000000e+00 : f32
      %16 = vector.broadcast %cst_13 : f32 to vector<1x128xf32>
      %17 = arith.divf %15, %16 : vector<1x128xf32>
      %18 = arith.mulf %12, %12 : vector<8x128xf32>
      %cst_14 = arith.constant dense<0.000000e+00> : vector<128xf32>
      %19 = vector.multi_reduction <add>, %18, %cst_14 [0] : vector<8x128xf32> to vector<128xf32>
      %20 = vector.shape_cast %19 : vector<128xf32> to vector<1x128xf32>
      %cst_15 = arith.constant 8.000000e+00 : f32
      %21 = vector.broadcast %cst_15 : f32 to vector<1x128xf32>
      %22 = arith.divf %20, %21 : vector<1x128xf32>
      %23 = arith.mulf %17, %17 : vector<1x128xf32>
      %24 = arith.subf %22, %23 : vector<1x128xf32>
      %cst_16 = arith.constant 0.000000e+00 : f32
      %25 = vector.broadcast %cst_16 : f32 to vector<1x128xf32>
      %26 = arith.maximumf %24, %25 : vector<1x128xf32>
      %27 = vector.extract_strided_slice %13 {offsets = [0, 0], sizes = [1, 128], strides = [1, 1]} : vector<4x128xf32> to vector<1x128xf32>
      %cst_17 = arith.constant 9.99999974E-6 : f32
      %28 = vector.broadcast %cst_17 : f32 to vector<1x128xf32>
      %29 = arith.addf %26, %28 : vector<1x128xf32>
      %30 = math.rsqrt %29 : vector<1x128xf32>
      %31 = arith.mulf %27, %30 : vector<1x128xf32>
      %32 = vector.extract_strided_slice %13 {offsets = [1, 0], sizes = [1, 128], strides = [1, 1]} : vector<4x128xf32> to vector<1x128xf32>
      %33 = arith.mulf %17, %31 : vector<1x128xf32>
      %34 = arith.subf %32, %33 : vector<1x128xf32>
      %35 = vector.broadcast %31 : vector<1x128xf32> to vector<8x128xf32>
      %36 = arith.mulf %12, %35 : vector<8x128xf32>
      %37 = vector.broadcast %34 : vector<1x128xf32> to vector<8x128xf32>
      %38 = arith.addf %36, %37 : vector<8x128xf32>
      %cst_18 = arith.constant 0.000000e+00 : f32
      %39 = vector.broadcast %cst_18 : f32 to vector<8x128xf32>
      %40 = arith.cmpf ogt, %38, %39 : vector<8x128xf32>
      %cst_19 = arith.constant 0.00999999977 : f32
      %41 = vector.broadcast %cst_19 : f32 to vector<8x128xf32>
      %42 = arith.mulf %41, %38 : vector<8x128xf32>
      %43 = arith.select %40, %38, %42 : vector<8x128xi1>, vector<8x128xf32>
      %44 = arith.truncf %43 : vector<8x128xf32> to vector<8x128xbf16>
      %c0_20 = arith.constant 0 : index
      %c0_21 = arith.constant 0 : index
      %45 = vector.load %arg3[%c0_20, %c0_21] : memref<128x128xbf16, #tpu.memory_space<vmem>>, vector<128x128xbf16>
      %cst_22 = arith.constant dense<0.000000e+00> : vector<8x128xf32>
      %46 = tpu.matmul %44, %45, %cst_22 {dimension_numbers = #tpu.dot_dimension_numbers<[1], [0], [0], [1], [0, 0, 1, 1], [], []>} : vector<8x128xbf16>, vector<128x128xbf16>, vector<8x128xf32> -> vector<8x128xf32>
      %cst_23 = arith.constant dense<0.000000e+00> : vector<128xf32>
      %47 = vector.multi_reduction <add>, %46, %cst_23 [0] : vector<8x128xf32> to vector<128xf32>
      %48 = vector.shape_cast %47 : vector<128xf32> to vector<1x128xf32>
      %cst_24 = arith.constant 8.000000e+00 : f32
      %49 = vector.broadcast %cst_24 : f32 to vector<1x128xf32>
      %50 = arith.divf %48, %49 : vector<1x128xf32>
      %51 = arith.mulf %46, %46 : vector<8x128xf32>
      %cst_25 = arith.constant dense<0.000000e+00> : vector<128xf32>
      %52 = vector.multi_reduction <add>, %51, %cst_25 [0] : vector<8x128xf32> to vector<128xf32>
      %53 = vector.shape_cast %52 : vector<128xf32> to vector<1x128xf32>
      %cst_26 = arith.constant 8.000000e+00 : f32
      %54 = vector.broadcast %cst_26 : f32 to vector<1x128xf32>
      %55 = arith.divf %53, %54 : vector<1x128xf32>
      %56 = arith.mulf %50, %50 : vector<1x128xf32>
      %57 = arith.subf %55, %56 : vector<1x128xf32>
      %cst_27 = arith.constant 0.000000e+00 : f32
      %58 = vector.broadcast %cst_27 : f32 to vector<1x128xf32>
      %59 = arith.maximumf %57, %58 : vector<1x128xf32>
      %60 = vector.extract_strided_slice %13 {offsets = [2, 0], sizes = [1, 128], strides = [1, 1]} : vector<4x128xf32> to vector<1x128xf32>
      %cst_28 = arith.constant 9.99999974E-6 : f32
      %61 = vector.broadcast %cst_28 : f32 to vector<1x128xf32>
      %62 = arith.addf %59, %61 : vector<1x128xf32>
      %63 = math.rsqrt %62 : vector<1x128xf32>
      %64 = arith.mulf %60, %63 : vector<1x128xf32>
      %65 = vector.extract_strided_slice %13 {offsets = [3, 0], sizes = [1, 128], strides = [1, 1]} : vector<4x128xf32> to vector<1x128xf32>
      %66 = arith.mulf %50, %64 : vector<1x128xf32>
      %67 = arith.subf %65, %66 : vector<1x128xf32>
      %68 = vector.broadcast %64 : vector<1x128xf32> to vector<8x128xf32>
      %69 = arith.mulf %46, %68 : vector<8x128xf32>
      %70 = vector.broadcast %67 : vector<1x128xf32> to vector<8x128xf32>
      %71 = arith.addf %69, %70 : vector<8x128xf32>
      %cst_29 = arith.constant 0.000000e+00 : f32
      %72 = vector.broadcast %cst_29 : f32 to vector<8x128xf32>
      %73 = arith.cmpf ogt, %71, %72 : vector<8x128xf32>
      %cst_30 = arith.constant 0.00999999977 : f32
      %74 = vector.broadcast %cst_30 : f32 to vector<8x128xf32>
      %75 = arith.mulf %74, %71 : vector<8x128xf32>
      %76 = arith.select %73, %71, %75 : vector<8x128xi1>, vector<8x128xf32>
      %c0_31 = arith.constant 0 : index
      %c0_32 = arith.constant 0 : index
      %77 = vector.load %arg5[%c0_31, %c0_32] : memref<8x128xf32, #tpu.memory_space<vmem>>, vector<8x128xf32>
      tpu.vector_store %arg5[%c0_31, %c0_32], %76 {strides = array<i32>} : memref<8x128xf32, #tpu.memory_space<vmem>>, vector<8x128xf32>,
    } else {
    }
    return
  }
  func.func @transform_0(%arg0: i32) -> (i32, i32) {
    %c0_i32 = arith.constant 0 : i32
    %c0_i32_0 = arith.constant 0 : i32
    return %c0_i32, %arg0 : i32, i32
  }
  func.func @transform_1(%arg0: i32) -> (i32, i32) {
    %c0_i32 = arith.constant 0 : i32
    %c0_i32_0 = arith.constant 0 : i32
    return %arg0, %c0_i32 : i32, i32
  }
  func.func @transform_2(%arg0: i32) -> (i32, i32) {
    %c0_i32 = arith.constant 0 : i32
    %c0_i32_0 = arith.constant 0 : i32
    %c0_i32_1 = arith.constant 0 : i32
    return %c0_i32, %c0_i32_0 : i32, i32
  }
  func.func @transform_3(%arg0: i32) -> (i32, i32) {
    %c0_i32 = arith.constant 0 : i32
    %c0_i32_0 = arith.constant 0 : i32
    %c0_i32_1 = arith.constant 0 : i32
    return %c0_i32, %c0_i32_0 : i32, i32
  }
  func.func @transform_4(%arg0: i32) -> (i32, i32) {
    %c0_i32 = arith.constant 0 : i32
    %c0_i32_0 = arith.constant 0 : i32
    %c0_i32_1 = arith.constant 0 : i32
    return %c0_i32, %c0_i32_0 : i32, i32
  }
}

</mosaic_0001>

<bundles_post_ra>
// kernel: tpu_custom_call.1
= control target key start
LH: loop header
LB: loop body
LE: loop exit
PB: predicated region body
PF: predicated region fallthrough
CT: control target
= control target key end

     0   :  { %9 = vsyncpa [#allocation4], 0  ;;  %s667_s0 = inlined_call_operand.hbm [shape: bf16[8,128], index: 0, kind: input, shape index: {}]   ;;  %s668_s1 = inlined_call_operand.hbm [shape: bf16[128,128], index: 1, kind: input, shape index: {}]   ;;  %s669_s2 = inlined_call_operand.hbm [shape: bf16[128,128], index: 2, kind: input, shape index: {}]   ;;  %s670_s3 = inlined_call_operand.vmem [shape: f32[4,128], index: 3, kind: input, shape index: {}]   ;;  %s671_s4 = inlined_call_operand.hbm [shape: f32[8,128], index: 4, kind: output, shape index: {}]  }
   0x1   :  { %10 = vsyncpa [#allocation7], 0 }
   0x2   :  { %11 = vsyncpa [#allocation5], 0  ;;  %s577_s15 = smov [#allocation6]   ;;  %s483_s19 = scalar_lea.hbm %s668_s1, 1024 }
   0x3   :  { %s27_s16 = sshll.u32 %s577_s15, 4  ;;  %p484_p0 = scmp.ne.s32.totalorder %s668_s1, %s483_s19  ;;  %s28_s16 = int_to_ptr.vmem [resolvable:$true] %s27_s16 }
   0x4   :  { %p487_p1 = scmp.lt.u32.totalorder %s483_s19, %s668_s1 }
   0x6   :  { %p489_p2 = pnand %p487_p1, %p484_p0 }
   0x8   :  { %492 = shalt.err (!%p489_p2)
}
   0x9   :  { %s493_s24 = scalar_lea.vmem %s28_s16, 1024  ;;  %p498_p4 = scmp.lt.s32.totalorder %s28_s16, %s28_s16 }
   0xa   :  { %p494_p3 = scmp.ne.s32.totalorder %s28_s16, %s493_s24  ;;  %p499_p5 = scmp.lt.s32.totalorder %s493_s24, %s493_s24 }
   0xc   :  { %p500_p6 = por %p499_p5, %p498_p4 }
   0xe   :  { %p501_p7 = pnand %p500_p6, %p494_p3 }
  0x10   :  { %504 = shalt.err (!%p501_p7)
}
  0x11   :  { %s578_s25 = smov 64   ;;  %s579_s26 = smov 4  }
  0x12   :  { %33 = dma.hbm_to_vmem [thread:$0]  %s668_s1, 1024, %s28_s16, [#allocation7], %s578_s25, %s578_s25, %s579_s26  }
  0x13   :  { %s580_s29 = smov [#allocation3]   ;;  %s581_s5 = smov [#allocation8]  }
  0x14   :  { %s18_s30 = sshll.u32 %s580_s29, 4  ;;  %s39_s6 = sshll.u32 %s581_s5, 4  ;;  %s19_s30 = int_to_ptr.vmem [resolvable:$true] %s18_s30  ;;  %s40_s6 = int_to_ptr.vmem [resolvable:$true] %s39_s6 }
  0x15   :  { %s505_s9 = scalar_lea.hbm %s667_s0, 64 }
  0x16   :  { %p506_p8 = scmp.ne.s32.totalorder %s667_s0, %s505_s9  ;;  %p509_p9 = scmp.lt.u32.totalorder %s505_s9, %s667_s0 }
  0x18   :  { %p511_p10 = pnand %p509_p9, %p506_p8 }
  0x1a   :  { %514 = shalt.err (!%p511_p10)
}
  0x1b   :  { %s515_s1 = scalar_lea.vmem %s19_s30, 64  ;;  %p520_p12 = scmp.lt.s32.totalorder %s19_s30, %s19_s30 }
  0x1c   :  { %p516_p11 = scmp.ne.s32.totalorder %s19_s30, %s515_s1  ;;  %p521_p13 = scmp.lt.s32.totalorder %s515_s1, %s515_s1 }
  0x1e   :  { %p522_p0 = por %p521_p13, %p520_p12 }
  0x20   :  { %p523_p1 = pnand %p522_p0, %p516_p11 }
  0x22   :  { %526 = shalt.err (!%p523_p1)
}
  0x23   :  { %21 = dma.hbm_to_vmem [thread:$0]  %s667_s0, 64, %s19_s30, [#allocation4]  }
  0x24   :  { %s527_s18 = scalar_lea.hbm %s669_s2, 1024 }
  0x25   :  { %p528_p2 = scmp.ne.s32.totalorder %s669_s2, %s527_s18  ;;  %p531_p3 = scmp.lt.u32.totalorder %s527_s18, %s669_s2 }
  0x27   :  { %p533_p4 = pnand %p531_p3, %p528_p2 }
  0x29   :  { %536 = shalt.err (!%p533_p4)
}
  0x2a   :  { %s537_s23 = scalar_lea.vmem %s40_s6, 1024  ;;  %p542_p6 = scmp.lt.s32.totalorder %s40_s6, %s40_s6 }
  0x2b   :  { %p538_p5 = scmp.ne.s32.totalorder %s40_s6, %s537_s23  ;;  %p543_p7 = scmp.lt.s32.totalorder %s537_s23, %s537_s23 }
  0x2d   :  { %p544_p8 = por %p543_p7, %p542_p6 }
  0x2f   :  { %p545_p9 = pnand %p544_p8, %p538_p5 }
  0x31   :  { %548 = shalt.err (!%p545_p9)
}
  0x32   :  { %45 = dma.hbm_to_vmem [thread:$0]  %s669_s2, 1024, %s40_s6, [#allocation7], %s578_s25, %s578_s25, %s579_s26  }
  0x33   :  { %571 = dma.done.wait [#allocation4], 64  }
  0x34   :  { %572 = vsyncadd [#allocation4], 4294967232 }
  0x35   :  { %573 = dma.done.wait [#allocation7], 2048  }
  0x36   :  { %574 = vsyncadd [#allocation7], 4294965248  ;;  %v582_v0 = vmov 0.0   ;;  %vm583_vm0 = vmmov 0   ;;  %v463_v1 = vld [vmem:[#allocation6] sm:$0xff]   ;;  %v464_v2 = vld [vmem:[#allocation6 + $0x8] sm:$0xff]   ;;  %v207_v41 = vlaneseq }
  0x37   :  { %415 = vmatprep.subr.bf16.mxu0 %v582_v0  ;;  %431 = vmatprep.mubr.msk.bf16.mxu0 %vm583_vm0, %v582_v0  ;;  %v465_v3 = vld [vmem:[#allocation6 + $0x10] sm:$0xff]   ;;  %v466_v4 = vld [vmem:[#allocation6 + $0x18] sm:$0xff]   ;;  %v467_v5 = vld [vmem:[#allocation6 + $0x20] sm:$0xff]  }
  0x38   :  { %435 = vmatprep.subr.bf16.mxu1 %v582_v0  ;;  %451 = vmatprep.mubr.msk.bf16.mxu1 %vm583_vm0, %v582_v0  ;;  %v468_v6 = vld [vmem:[#allocation6 + $0x28] sm:$0xff]   ;;  %v469_v7 = vld [vmem:[#allocation6 + $0x30] sm:$0xff]   ;;  %v470_v8 = vld [vmem:[#allocation6 + $0x38] sm:$0xff]   ;;  %v208_v42 = vshrl.u32 %v207_v41, 7 }
  0x39   :  { %416 = vmatpush3.bf16.msra.mxu0 %v463_v1  ;;  %v58_v9 = vld [vmem:[#allocation3] sm:$0xf]  ;;  %v471_v10 = vld [vmem:[#allocation8] sm:$0xff]   ;;  %v472_v11 = vld [vmem:[#allocation8 + $0x8] sm:$0xff]  }
  0x3a   :  { %417 = vmatprep.subr.bf16.mxu0 %v582_v0  ;;  %436 = vmatpush3.bf16.msra.mxu1 %v471_v10  ;;  %v473_v12 = vld [vmem:[#allocation8 + $0x10] sm:$0xff]   ;;  %v474_v13 = vld [vmem:[#allocation8 + $0x18] sm:$0xff]   ;;  %v475_v14 = vld [vmem:[#allocation8 + $0x20] sm:$0xff]   ;;  %v209_v46 = vsub.s32 0, %v208_v42  ;;  %v214_v50 = vsub.s32 1, %v208_v42 }
  0x3b   :  { %437 = vmatprep.subr.bf16.mxu1 %v582_v0  ;;  %v476_v15 = vld [vmem:[#allocation8 + $0x28] sm:$0xff]   ;;  %v477_v16 = vld [vmem:[#allocation8 + $0x30] sm:$0xff]   ;;  %v478_v17 = vld [vmem:[#allocation8 + $0x38] sm:$0xff]  }
  0x3c   :  { %v179_v43 = vld [vmem:[%s670_s3] sm:$0xf]  ;;  %s584_s3 = smov [#allocation9]  }
  0x3d   :  { %418 = vmatpush3.bf16.msra.mxu0 %v464_v2  ;;  %s371_s26 = sshll.u32 %s584_s3, 4  ;;  %s372_s26 = int_to_ptr.vmem [resolvable:$true] %s371_s26 }
  0x3e   :  { %419 = vmatprep.subr.bf16.mxu0 %v582_v0  ;;  %438 = vmatpush3.bf16.msra.mxu1 %v472_v11  ;;  %s549_s27 = scalar_lea.vmem %s372_s26, 128  ;;  %p554_p11 = scmp.lt.s32.totalorder %s372_s26, %s372_s26 }
  0x3f   :  { %439 = vmatprep.subr.bf16.mxu1 %v582_v0  ;;  %p550_p10 = scmp.ne.s32.totalorder %s372_s26, %s549_s27  ;;  %p555_p12 = scmp.lt.s32.totalorder %s549_s27, %s549_s27 }
  0x41   :  { %420 = vmatpush3.bf16.msra.mxu0 %v465_v3  ;;  %p556_p13 = por %p555_p12, %p554_p11 }
  0x42   :  { %421 = vmatprep.subr.bf16.mxu0 %v582_v0  ;;  %440 = vmatpush3.bf16.msra.mxu1 %v473_v12 }
  0x43   :  { %441 = vmatprep.subr.bf16.mxu1 %v582_v0  ;;  %p557_p0 = pnand %p556_p13, %p550_p10 }
  0x45   :  { %422 = vmatpush3.bf16.msra.mxu0 %v466_v4 }
  0x46   :  { %423 = vmatprep.subr.bf16.mxu0 %v582_v0  ;;  %442 = vmatpush3.bf16.msra.mxu1 %v474_v13 }
  0x47   :  { %443 = vmatprep.subr.bf16.mxu1 %v582_v0 }
  0x49   :  { %424 = vmatpush3.bf16.msra.mxu0 %v467_v5 }
  0x4a   :  { %425 = vmatprep.subr.bf16.mxu0 %v582_v0  ;;  %444 = vmatpush3.bf16.msra.mxu1 %v475_v14 }
  0x4b   :  { %445 = vmatprep.subr.bf16.mxu1 %v582_v0 }
  0x4d   :  { %426 = vmatpush3.bf16.msra.mxu0 %v468_v6 }
  0x4e   :  { %427 = vmatprep.subr.bf16.mxu0 %v582_v0  ;;  %446 = vmatpush3.bf16.msra.mxu1 %v476_v15 }
  0x4f   :  { %447 = vmatprep.subr.bf16.mxu1 %v582_v0 }
  0x51   :  { %428 = vmatpush3.bf16.msra.mxu0 %v469_v7 }
  0x52   :  { %429 = vmatprep.subr.bf16.mxu0 %v582_v0  ;;  %448 = vmatpush3.bf16.msra.mxu1 %v477_v16 }
  0x53   :  { %449 = vmatprep.subr.bf16.mxu1 %v582_v0 }
  0x55   :  { %430 = vmatpush3.bf16.msra.mxu0 %v470_v8 }
  0x56   :  { %450 = vmatpush3.bf16.msra.mxu1 %v478_v17 }
  0x58   :  { %432 = vmatmul.mubr.bf16.vlgmr.msra.gmra.mrb[0].mxu0 %v58_v9 }
 0x12b   :  { %v157_v18 = vpop.f32.mrb[0].mxu0 }
 0x12c   :  { %v180_v19 = vrot.slane %v157_v18, 4  ;;  %v188_v20 = vmul.f32 %v157_v18, %v157_v18  ;;  %v433_v21 = vpop.f32.mrb[1].mxu0 }
 0x12d   :  { %v160_v22 = vpop.f32.mrb[2].mxu0 }
 0x12e   :  { %v181_v23 = vadd.f32 %v180_v19, %v157_v18  ;;  %v189_v24 = vrot.slane %v188_v20, 4  ;;  %v434_v25 = vpop.f32.mrb[3].mxu0  ;;  %v353_v19 = vsub.s32 2, %v208_v42 }
 0x130   :  { %v182_v26 = vrot.slane %v181_v23, 2  ;;  %v190_v27 = vadd.f32 %v189_v24, %v188_v20 }
 0x132   :  { %v183_v28 = vadd.f32 %v182_v26, %v181_v23  ;;  %v191_v29 = vrot.slane %v190_v27, 2  ;;  %v358_v23 = vsub.s32 3, %v208_v42 }
 0x134   :  { %v184_v30 = vrot.slane %v183_v28, 1  ;;  %v192_v31 = vadd.f32 %v191_v29, %v190_v27 }
 0x136   :  { %v185_v32 = vadd.f32 %v184_v30, %v183_v28  ;;  %v193_v33 = vrot.slane %v192_v31, 1 }
 0x138   :  { %v187_v34 = vmul.f32 0.125, %v185_v32  ;;  %v194_v35 = vadd.f32 %v193_v33, %v192_v31 }
 0x13a   :  { %v195_v36 = vmul.f32 0.125, %v194_v35  ;;  %v196_v37 = vmul.f32 %v187_v34, %v187_v34 }
 0x13c   :  { %v197_v38 = vsub.f32 %v195_v36, %v196_v37 }
 0x13e   :  { %v198_v39 = vmax.f32 %v197_v38, 0.0 }
 0x140   :  { %v199_v40 = vadd.f32 1e-05, %v198_v39 }
 0x142   :  { %479 = vrsqrt.f32 %v199_v40 }
 0x14c   :  { %v480_v44 = vpop.eup %479 }
 0x14d   :  { %v201_v45 = vmul.f32 %v480_v44, %v179_v43 }
 0x14f   :  { %v202_v47 = vmul.f32 %v201_v45, %v187_v34  ;;  %v210_v49 = vrot.slane %v201_v45, %v209_v46 }
 0x151   :  { %v204_v48 = vrot.slane %v202_v47, 7  ;;  %v211_v52 = vmul.f32 %v210_v49, %v157_v18 }
 0x153   :  { %v206_v51 = vsub.f32 %v179_v43, %v204_v48 }
 0x155   :  { %v215_v53 = vrot.slane %v206_v51, %v214_v50 }
 0x157   :  { %v216_v54 = vadd.f32 %v215_v53, %v211_v52 }
 0x159   :  { %vm217_vm1 = vcmp.gt.f32.partialorder %v216_v54, 0.0  ;;  %v218_v55 = vmul.f32 0.01, %v216_v54 }
 0x15b   :  { %v219_v56 = vsel %vm217_vm1, %v216_v54, %v218_v55 }
 0x15c   :  { %v220_v57 = vpack.c.bf16 %v219_v56, %v219_v56 }
 0x15e   :  { %452 = vmatmul.mubr.bf16.vlgmr.msra.gmra.mrb[0].mxu1 %v220_v57 }
 0x231   :  { %v319_v58 = vpop.f32.mrb[0].mxu1 }
 0x232   :  { %v325_v59 = vrot.slane %v319_v58, 4  ;;  %v332_v60 = vmul.f32 %v319_v58, %v319_v58  ;;  %v453_v61 = vpop.f32.mrb[1].mxu1 }
 0x233   :  { %v322_v62 = vpop.f32.mrb[2].mxu1 }
 0x234   :  { %v326_v63 = vadd.f32 %v325_v59, %v319_v58  ;;  %v333_v0 = vrot.slane %v332_v60, 4  ;;  %v454_v1 = vpop.f32.mrb[3].mxu1 }
 0x236   :  { %v327_v2 = vrot.slane %v326_v63, 2  ;;  %v334_v3 = vadd.f32 %v333_v0, %v332_v60 }
 0x238   :  { %v328_v4 = vadd.f32 %v327_v2, %v326_v63  ;;  %v335_v5 = vrot.slane %v334_v3, 2 }
 0x23a   :  { %v329_v6 = vrot.slane %v328_v4, 1  ;;  %v336_v7 = vadd.f32 %v335_v5, %v334_v3 }
 0x23c   :  { %v330_v8 = vadd.f32 %v329_v6, %v328_v4  ;;  %v337_v9 = vrot.slane %v336_v7, 1 }
 0x23e   :  { %v331_v10 = vmul.f32 0.125, %v330_v8  ;;  %v338_v11 = vadd.f32 %v337_v9, %v336_v7 }
 0x240   :  { %v339_v12 = vmul.f32 0.125, %v338_v11  ;;  %v340_v13 = vmul.f32 %v331_v10, %v331_v10 }
 0x242   :  { %v341_v14 = vsub.f32 %v339_v12, %v340_v13 }
 0x244   :  { %v342_v15 = vmax.f32 %v341_v14, 0.0 }
 0x246   :  { %v343_v16 = vadd.f32 1e-05, %v342_v15 }
 0x248   :  { %481 = vrsqrt.f32 %v343_v16 }
 0x252   :  { %v482_v17 = vpop.eup %481 }
 0x253   :  { %v345_v18 = vmul.f32 %v482_v17, %v179_v43 }
 0x255   :  { %v346_v20 = vmul.f32 %v345_v18, %v331_v10  ;;  %v354_v22 = vrot.slane %v345_v18, %v353_v19 }
 0x257   :  { %v348_v21 = vrot.slane %v346_v20, 7  ;;  %v355_v25 = vmul.f32 %v354_v22, %v319_v58 }
 0x259   :  { %v350_v24 = vsub.f32 %v179_v43, %v348_v21 }
 0x25b   :  { %v359_v26 = vrot.slane %v350_v24, %v358_v23 }
 0x25d   :  { %v360_v27 = vadd.f32 %v359_v26, %v355_v25 }
 0x25f   :  { %vm361_vm2 = vcmp.gt.f32.partialorder %v360_v27, 0.0  ;;  %v362_v28 = vmul.f32 0.01, %v360_v27 }
 0x261   :  { %v363_v29 = vsel %vm361_vm2, %v360_v27, %v362_v28 }
 0x262   :  { %364 = vst [vmem:[#allocation9] sm:$0xff] %v363_v29 }
 0x263   :  { %560 = shalt.err (!%p557_p0)
}
 0x264   :  { %s561_s30 = scalar_lea.hbm %s671_s4, 128 }
 0x265   :  { %p562_p1 = scmp.ne.s32.totalorder %s671_s4, %s561_s30  ;;  %p565_p2 = scmp.lt.u32.totalorder %s561_s30, %s671_s4 }
 0x267   :  { %p567_p3 = pnand %p565_p2, %p562_p1 }
 0x269   :  { %570 = shalt.err (!%p567_p3)
}
 0x26a   :  { %374 = dma.vmem_to_hbm [thread:$0]  %s372_s26, 128, %s671_s4, [#allocation5]  }
 0x26b   :  { %575 = dma.done.wait [#allocation5], 128  }
 0x26c   :  { %576 = vsyncadd [#allocation5], 4294967168 }
 0x26d   :  { %378 = vsyncpa [#allocation4], 1 }
 0x26e   :  { %379 = vsyncpa [#allocation7], 1 }
 0x26f   :  { %380 = vsyncpa [#allocation5], 1 }

// kernel: tpu_custom_call.1
= control target key start
LH: loop header
LB: loop body
LE: loop exit
PB: predicated region body
PF: predicated region fallthrough
CT: control target
= control target key end

     0   :  { %9 = vsyncpa [#allocation4], 0  ;;  %s667_s0 = inlined_call_operand.hbm [shape: bf16[8,128], index: 0, kind: input, shape index: {}]   ;;  %s668_s1 = inlined_call_operand.hbm [shape: bf16[128,128], index: 1, kind: input, shape index: {}]   ;;  %s669_s2 = inlined_call_operand.hbm [shape: bf16[128,128], index: 2, kind: input, shape index: {}]   ;;  %s670_s3 = inlined_call_operand.vmem [shape: f32[4,128], index: 3, kind: input, shape index: {}]   ;;  %s671_s4 = inlined_call_operand.hbm [shape: f32[8,128], index: 4, kind: output, shape index: {}]  }
   0x1   :  { %10 = vsyncpa [#allocation7], 0 }
   0x2   :  { %11 = vsyncpa [#allocation5], 0  ;;  %s577_s15 = smov [#allocation6]   ;;  %s483_s19 = scalar_lea.hbm %s668_s1, 1024 }
   0x3   :  { %s27_s16 = sshll.u32 %s577_s15, 4  ;;  %p484_p0 = scmp.ne.s32.totalorder %s668_s1, %s483_s19  ;;  %s28_s16 = int_to_ptr.vmem [resolvable:$true] %s27_s16 }
   0x4   :  { %p487_p1 = scmp.lt.u32.totalorder %s483_s19, %s668_s1 }
   0x6   :  { %p489_p2 = pnand %p487_p1, %p484_p0 }
   0x8   :  { %492 = shalt.err (!%p489_p2)
}
   0x9   :  { %s493_s24 = scalar_lea.vmem %s28_s16, 1024  ;;  %p498_p4 = scmp.lt.s32.totalorder %s28_s16, %s28_s16 }
   0xa   :  { %p494_p3 = scmp.ne.s32.totalorder %s28_s16, %s493_s24  ;;  %p499_p5 = scmp.lt.s32.totalorder %s493_s24, %s493_s24 }
   0xc   :  { %p500_p6 = por %p499_p5, %p498_p4 }
   0xe   :  { %p501_p7 = pnand %p500_p6, %p494_p3 }
  0x10   :  { %504 = shalt.err (!%p501_p7)
}
  0x11   :  { %s578_s25 = smov 64   ;;  %s579_s26 = smov 4  }
  0x12   :  { %33 = dma.hbm_to_vmem [thread:$0]  %s668_s1, 1024, %s28_s16, [#allocation7], %s578_s25, %s578_s25, %s579_s26  }
  0x13   :  { %s580_s29 = smov [#allocation3]   ;;  %s581_s5 = smov [#allocation8]  }
  0x14   :  { %s18_s30 = sshll.u32 %s580_s29, 4  ;;  %s39_s6 = sshll.u32 %s581_s5, 4  ;;  %s19_s30 = int_to_ptr.vmem [resolvable:$true] %s18_s30  ;;  %s40_s6 = int_to_ptr.vmem [resolvable:$true] %s39_s6 }
  0x15   :  { %s505_s9 = scalar_lea.hbm %s667_s0, 64 }
  0x16   :  { %p506_p8 = scmp.ne.s32.totalorder %s667_s0, %s505_s9  ;;  %p509_p9 = scmp.lt.u32.totalorder %s505_s9, %s667_s0 }
  0x18   :  { %p511_p10 = pnand %p509_p9, %p506_p8 }
  0x1a   :  { %514 = shalt.err (!%p511_p10)
}
  0x1b   :  { %s515_s1 = scalar_lea.vmem %s19_s30, 64  ;;  %p520_p12 = scmp.lt.s32.totalorder %s19_s30, %s19_s30 }
  0x1c   :  { %p516_p11 = scmp.ne.s32.totalorder %s19_s30, %s515_s1  ;;  %p521_p13 = scmp.lt.s32.totalorder %s515_s1, %s515_s1 }
  0x1e   :  { %p522_p0 = por %p521_p13, %p520_p12 }
  0x20   :  { %p523_p1 = pnand %p522_p0, %p516_p11 }
  0x22   :  { %526 = shalt.err (!%p523_p1)
}
  0x23   :  { %21 = dma.hbm_to_vmem [thread:$0]  %s667_s0, 64, %s19_s30, [#allocation4]  }
  0x24   :  { %s527_s18 = scalar_lea.hbm %s669_s2, 1024 }
  0x25   :  { %p528_p2 = scmp.ne.s32.totalorder %s669_s2, %s527_s18  ;;  %p531_p3 = scmp.lt.u32.totalorder %s527_s18, %s669_s2 }
  0x27   :  { %p533_p4 = pnand %p531_p3, %p528_p2 }
  0x29   :  { %536 = shalt.err (!%p533_p4)
}
  0x2a   :  { %s537_s23 = scalar_lea.vmem %s40_s6, 1024  ;;  %p542_p6 = scmp.lt.s32.totalorder %s40_s6, %s40_s6 }
  0x2b   :  { %p538_p5 = scmp.ne.s32.totalorder %s40_s6, %s537_s23  ;;  %p543_p7 = scmp.lt.s32.totalorder %s537_s23, %s537_s23 }
  0x2d   :  { %p544_p8 = por %p543_p7, %p542_p6 }
  0x2f   :  { %p545_p9 = pnand %p544_p8, %p538_p5 }
  0x31   :  { %548 = shalt.err (!%p545_p9)
}
  0x32   :  { %45 = dma.hbm_to_vmem [thread:$0]  %s669_s2, 1024, %s40_s6, [#allocation7], %s578_s25, %s578_s25, %s579_s26  }
  0x33   :  { %571 = dma.done.wait [#allocation4], 64  }
  0x34   :  { %572 = vsyncadd [#allocation4], 4294967232 }
  0x35   :  { %573 = dma.done.wait [#allocation7], 2048  }
  0x36   :  { %574 = vsyncadd [#allocation7], 4294965248  ;;  %v582_v0 = vmov 0.0   ;;  %vm583_vm0 = vmmov 0   ;;  %v463_v1 = vld [vmem:[#allocation6] sm:$0xff]   ;;  %v464_v2 = vld [vmem:[#allocation6 + $0x8] sm:$0xff]   ;;  %v207_v41 = vlaneseq }
  0x37   :  { %415 = vmatprep.subr.bf16.mxu0 %v582_v0  ;;  %431 = vmatprep.mubr.msk.bf16.mxu0 %vm583_vm0, %v582_v0  ;;  %v465_v3 = vld [vmem:[#allocation6 + $0x10] sm:$0xff]   ;;  %v466_v4 = vld [vmem:[#allocation6 + $0x18] sm:$0xff]   ;;  %v467_v5 = vld [vmem:[#allocation6 + $0x20] sm:$0xff]  }
  0x38   :  { %435 = vmatprep.subr.bf16.mxu1 %v582_v0  ;;  %451 = vmatprep.mubr.msk.bf16.mxu1 %vm583_vm0, %v582_v0  ;;  %v468_v6 = vld [vmem:[#allocation6 + $0x28] sm:$0xff]   ;;  %v469_v7 = vld [vmem:[#allocation6 + $0x30] sm:$0xff]   ;;  %v470_v8 = vld [vmem:[#allocation6 + $0x38] sm:$0xff]   ;;  %v208_v42 = vshrl.u32 %v207_v41, 7 }
  0x39   :  { %416 = vmatpush3.bf16.msra.mxu0 %v463_v1  ;;  %v58_v9 = vld [vmem:[#allocation3] sm:$0xf]  ;;  %v471_v10 = vld [vmem:[#allocation8] sm:$0xff]   ;;  %v472_v11 = vld [vmem:[#allocation8 + $0x8] sm:$0xff]  }
  0x3a   :  { %417 = vmatprep.subr.bf16.mxu0 %v582_v0  ;;  %436 = vmatpush3.bf16.msra.mxu1 %v471_v10  ;;  %v473_v12 = vld [vmem:[#allocation8 + $0x10] sm:$0xff]   ;;  %v474_v13 = vld [vmem:[#allocation8 + $0x18] sm:$0xff]   ;;  %v475_v14 = vld [vmem:[#allocation8 + $0x20] sm:$0xff]   ;;  %v209_v46 = vsub.s32 0, %v208_v42  ;;  %v214_v50 = vsub.s32 1, %v208_v42 }
  0x3b   :  { %437 = vmatprep.subr.bf16.mxu1 %v582_v0  ;;  %v476_v15 = vld [vmem:[#allocation8 + $0x28] sm:$0xff]   ;;  %v477_v16 = vld [vmem:[#allocation8 + $0x30] sm:$0xff]   ;;  %v478_v17 = vld [vmem:[#allocation8 + $0x38] sm:$0xff]  }
  0x3c   :  { %v179_v43 = vld [vmem:[%s670_s3] sm:$0xf]  ;;  %s584_s3 = smov [#allocation9]  }
  0x3d   :  { %418 = vmatpush3.bf16.msra.mxu0 %v464_v2  ;;  %s371_s26 = sshll.u32 %s584_s3, 4  ;;  %s372_s26 = int_to_ptr.vmem [resolvable:$true] %s371_s26 }
  0x3e   :  { %419 = vmatprep.subr.bf16.mxu0 %v582_v0  ;;  %438 = vmatpush3.bf16.msra.mxu1 %v472_v11  ;;  %s549_s27 = scalar_lea.vmem %s372_s26, 128  ;;  %p554_p11 = scmp.lt.s32.totalorder %s372_s26, %s372_s26 }
  0x3f   :  { %439 = vmatprep.subr.bf16.mxu1 %v582_v0  ;;  %p550_p10 = scmp.ne.s32.totalorder %s372_s26, %s549_s27  ;;  %p555_p12 = scmp.lt.s32.totalorder %s549_s27, %s549_s27 }
  0x41   :  { %420 = vmatpush3.bf16.msra.mxu0 %v465_v3  ;;  %p556_p13 = por %p555_p12, %p554_p11 }
  0x42   :  { %421 = vmatprep.subr.bf16.mxu0 %v582_v0  ;;  %440 = vmatpush3.bf16.msra.mxu1 %v473_v12 }
  0x43   :  { %441 = vmatprep.subr.bf16.mxu1 %v582_v0  ;;  %p557_p0 = pnand %p556_p13, %p550_p10 }
  0x45   :  { %422 = vmatpush3.bf16.msra.mxu0 %v466_v4 }
  0x46   :  { %423 = vmatprep.subr.bf16.mxu0 %v582_v0  ;;  %442 = vmatpush3.bf16.msra.mxu1 %v474_v13 }
  0x47   :  { %443 = vmatprep.subr.bf16.mxu1 %v582_v0 }
  0x49   :  { %424 = vmatpush3.bf16.msra.mxu0 %v467_v5 }
  0x4a   :  { %425 = vmatprep.subr.bf16.mxu0 %v582_v0  ;;  %444 = vmatpush3.bf16.msra.mxu1 %v475_v14 }
  0x4b   :  { %445 = vmatprep.subr.bf16.mxu1 %v582_v0 }
  0x4d   :  { %426 = vmatpush3.bf16.msra.mxu0 %v468_v6 }
  0x4e   :  { %427 = vmatprep.subr.bf16.mxu0 %v582_v0  ;;  %446 = vmatpush3.bf16.msra.mxu1 %v476_v15 }
  0x4f   :  { %447 = vmatprep.subr.bf16.mxu1 %v582_v0 }
  0x51   :  { %428 = vmatpush3.bf16.msra.mxu0 %v469_v7 }
  0x52   :  { %429 = vmatprep.subr.bf16.mxu0 %v582_v0  ;;  %448 = vmatpush3.bf16.msra.mxu1 %v477_v16 }
  0x53   :  { %449 = vmatprep.subr.bf16.mxu1 %v582_v0 }
  0x55   :  { %430 = vmatpush3.bf16.msra.mxu0 %v470_v8 }
  0x56   :  { %450 = vmatpush3.bf16.msra.mxu1 %v478_v17 }
  0x58   :  { %432 = vmatmul.mubr.bf16.vlgmr.msra.gmra.mrb[0].mxu0 %v58_v9 }
 0x12b   :  { %v157_v18 = vpop.f32.mrb[0].mxu0 }
 0x12c   :  { %v180_v19 = vrot.slane %v157_v18, 4  ;;  %v188_v20 = vmul.f32 %v157_v18, %v157_v18  ;;  %v433_v21 = vpop.f32.mrb[1].mxu0 }
 0x12d   :  { %v160_v22 = vpop.f32.mrb[2].mxu0 }
 0x12e   :  { %v181_v23 = vadd.f32 %v180_v19, %v157_v18  ;;  %v189_v24 = vrot.slane %v188_v20, 4  ;;  %v434_v25 = vpop.f32.mrb[3].mxu0  ;;  %v353_v19 = vsub.s32 2, %v208_v42 }
 0x130   :  { %v182_v26 = vrot.slane %v181_v23, 2  ;;  %v190_v27 = vadd.f32 %v189_v24, %v188_v20 }
 0x132   :  { %v183_v28 = vadd.f32 %v182_v26, %v181_v23  ;;  %v191_v29 = vrot.slane %v190_v27, 2  ;;  %v358_v23 = vsub.s32 3, %v208_v42 }
 0x134   :  { %v184_v30 = vrot.slane %v183_v28, 1  ;;  %v192_v31 = vadd.f32 %v191_v29, %v190_v27 }
 0x136   :  { %v185_v32 = vadd.f32 %v184_v30, %v183_v28  ;;  %v193_v33 = vrot.slane %v192_v31, 1 }
 0x138   :  { %v187_v34 = vmul.f32 0.125, %v185_v32  ;;  %v194_v35 = vadd.f32 %v193_v33, %v192_v31 }
 0x13a   :  { %v195_v36 = vmul.f32 0.125, %v194_v35  ;;  %v196_v37 = vmul.f32 %v187_v34, %v187_v34 }
 0x13c   :  { %v197_v38 = vsub.f32 %v195_v36, %v196_v37 }
 0x13e   :  { %v198_v39 = vmax.f32 %v197_v38, 0.0 }
 0x140   :  { %v199_v40 = vadd.f32 1e-05, %v198_v39 }
 0x142   :  { %479 = vrsqrt.f32 %v199_v40 }
 0x14c   :  { %v480_v44 = vpop.eup %479 }
 0x14d   :  { %v201_v45 = vmul.f32 %v480_v44, %v179_v43 }
 0x14f   :  { %v202_v47 = vmul.f32 %v201_v45, %v187_v34  ;;  %v210_v49 = vrot.slane %v201_v45, %v209_v46 }
 0x151   :  { %v204_v48 = vrot.slane %v202_v47, 7  ;;  %v211_v52 = vmul.f32 %v210_v49, %v157_v18 }
 0x153   :  { %v206_v51 = vsub.f32 %v179_v43, %v204_v48 }
 0x155   :  { %v215_v53 = vrot.slane %v206_v51, %v214_v50 }
 0x157   :  { %v216_v54 = vadd.f32 %v215_v53, %v211_v52 }
 0x159   :  { %vm217_vm1 = vcmp.gt.f32.partialorder %v216_v54, 0.0  ;;  %v218_v55 = vmul.f32 0.01, %v216_v54 }
 0x15b   :  { %v219_v56 = vsel %vm217_vm1, %v216_v54, %v218_v55 }
 0x15c   :  { %v220_v57 = vpack.c.bf16 %v219_v56, %v219_v56 }
 0x15e   :  { %452 = vmatmul.mubr.bf16.vlgmr.msra.gmra.mrb[0].mxu1 %v220_v57 }
 0x231   :  { %v319_v58 = vpop.f32.mrb[0].mxu1 }
 0x232   :  { %v325_v59 = vrot.slane %v319_v58, 4  ;;  %v332_v60 = vmul.f32 %v319_v58, %v319_v58  ;;  %v453_v61 = vpop.f32.mrb[1].mxu1 }
 0x233   :  { %v322_v62 = vpop.f32.mrb[2].mxu1 }
 0x234   :  { %v326_v63 = vadd.f32 %v325_v59, %v319_v58  ;;  %v333_v0 = vrot.slane %v332_v60, 4  ;;  %v454_v1 = vpop.f32.mrb[3].mxu1 }
 0x236   :  { %v327_v2 = vrot.slane %v326_v63, 2  ;;  %v334_v3 = vadd.f32 %v333_v0, %v332_v60 }
 0x238   :  { %v328_v4 = vadd.f32 %v327_v2, %v326_v63  ;;  %v335_v5 = vrot.slane %v334_v3, 2 }
 0x23a   :  { %v329_v6 = vrot.slane %v328_v4, 1  ;;  %v336_v7 = vadd.f32 %v335_v5, %v334_v3 }
 0x23c   :  { %v330_v8 = vadd.f32 %v329_v6, %v328_v4  ;;  %v337_v9 = vrot.slane %v336_v7, 1 }
 0x23e   :  { %v331_v10 = vmul.f32 0.125, %v330_v8  ;;  %v338_v11 = vadd.f32 %v337_v9, %v336_v7 }
 0x240   :  { %v339_v12 = vmul.f32 0.125, %v338_v11  ;;  %v340_v13 = vmul.f32 %v331_v10, %v331_v10 }
 0x242   :  { %v341_v14 = vsub.f32 %v339_v12, %v340_v13 }
 0x244   :  { %v342_v15 = vmax.f32 %v341_v14, 0.0 }
 0x246   :  { %v343_v16 = vadd.f32 1e-05, %v342_v15 }
 0x248   :  { %481 = vrsqrt.f32 %v343_v16 }
 0x252   :  { %v482_v17 = vpop.eup %481 }
 0x253   :  { %v345_v18 = vmul.f32 %v482_v17, %v179_v43 }
 0x255   :  { %v346_v20 = vmul.f32 %v345_v18, %v331_v10  ;;  %v354_v22 = vrot.slane %v345_v18, %v353_v19 }
 0x257   :  { %v348_v21 = vrot.slane %v346_v20, 7  ;;  %v355_v25 = vmul.f32 %v354_v22, %v319_v58 }
 0x259   :  { %v350_v24 = vsub.f32 %v179_v43, %v348_v21 }
 0x25b   :  { %v359_v26 = vrot.slane %v350_v24, %v358_v23 }
 0x25d   :  { %v360_v27 = vadd.f32 %v359_v26, %v355_v25 }
 0x25f   :  { %vm361_vm2 = vcmp.gt.f32.partialorder %v360_v27, 0.0  ;;  %v362_v28 = vmul.f32 0.01, %v360_v27 }
 0x261   :  { %v363_v29 = vsel %vm361_vm2, %v360_v27, %v362_v28 }
 0x262   :  { %364 = vst [vmem:[#allocation9] sm:$0xff] %v363_v29 }
 0x263   :  { %560 = shalt.err (!%p557_p0)
}
 0x264   :  { %s561_s30 = scalar_lea.hbm %s671_s4, 128 }
 0x265   :  { %p562_p1 = scmp.ne.s32.totalorder %s671_s4, %s561_s30  ;;  %p565_p2 = scmp.lt.u32.totalorder %s561_s30, %s671_s4 }
 0x267   :  { %p567_p3 = pnand %p565_p2, %p562_p1 }
 0x269   :  { %570 = shalt.err (!%p567_p3)
}
 0x26a   :  { %374 = dma.vmem_to_hbm [thread:$0]  %s372_s26, 128, %s671_s4, [#allocation5]  }
 0x26b   :  { %575 = dma.done.wait [#allocation5], 128  }
 0x26c   :  { %576 = vsyncadd [#allocation5], 4294967168 }
 0x26d   :  { %378 = vsyncpa [#allocation4], 1 }
 0x26e   :  { %379 = vsyncpa [#allocation7], 1 }
 0x26f   :  { %380 = vsyncpa [#allocation5], 1 }

</bundles_post_ra>
